<compile_context>
chip_gen: v6e
topology: v6e:2x2x1
jax: 0.10.0
libtpu: 0.0.40
codegen_flags: <defaults>
</compile_context>

<pallas_src>
import functools
import math

import jax
import jax.numpy as jnp
from jax.experimental import pallas as pl
from jax.experimental.pallas import tpu as pltpu


def _mlp_kernel(x_ref, w1_ref, b1_ref, w2_ref, b2_ref, w3_ref, b3_ref, o_ref):
    # Three fused matmuls + bias + ReLU for one batch tile. MXU accumulates in f32;
    # bias/ReLU run in f32 on the VPU; operands may be bf16 (compute_dtype).
    h = jnp.dot(x_ref[...], w1_ref[...], preferred_element_type=jnp.float32)
    h = jnp.maximum(h + b1_ref[...], 0.0)
    h = jnp.dot(h.astype(w2_ref.dtype), w2_ref[...], preferred_element_type=jnp.float32)
    h = jnp.maximum(h + b2_ref[...], 0.0)
    h = jnp.dot(h.astype(w3_ref.dtype), w3_ref[...], preferred_element_type=jnp.float32)
    h = jnp.maximum(h + b3_ref[...], 0.0)
    o_ref[...] = h.astype(o_ref.dtype)


@functools.partial(jax.jit, static_argnames=("tile_rows", "fold", "compute_dtype"))
def mlp_encoder(x, params, *, tile_rows=512, fold=None, compute_dtype=jnp.float32):
    """x: (..., in_channels) float32 -> (..., output_size) float32."""
    w1, b1, w2, b2, w3, b3 = params
    in_channels = w1.shape[0]
    h1, h2, out_size = w1.shape[1], w2.shape[1], w3.shape[1]
    lead = x.shape[:-1]

    xb = x.reshape(-1, in_channels)
    B = xb.shape[0]

    # --- choose a row-fold factor so feature slabs become 128-lane dense ---------
    if fold is None:
        widest = max(in_channels, h1, h2, out_size)
        fold = 1
        if widest <= 256:
            f = 128 // math.gcd(128, math.gcd(in_channels, out_size))
            if f * widest <= 1024:
                fold = f
    fin, f1, f2, fout = fold * in_channels, fold * h1, fold * h2, fold * out_size

    # --- pad batch so it maps exactly onto (grid * tile_rows * fold) rows --------
    slab_rows = -(-B // fold)                         # ceil(B / fold)
    tile_rows_eff = min(tile_rows, ((slab_rows + 7) // 8) * 8)
    slab_rows_pad = -(-slab_rows // tile_rows_eff) * tile_rows_eff
    B_pad = slab_rows_pad * fold
    if B_pad != B:
        xb = jnp.pad(xb, ((0, B_pad - B), (0, 0)))

    cd = compute_dtype
    x_slab = xb.astype(cd).reshape(slab_rows_pad, fin)   # pure row-major view

    # --- block-diagonal weight expansion (cheap; hoist out of hot loop if reused)
    eye = jnp.eye(fold, dtype=cd)
    w1b = jnp.kron(eye, w1.astype(cd))                   # (fin, f1)
    w2b = jnp.kron(eye, w2.astype(cd))                   # (f1, f2)
    w3b = jnp.kron(eye, w3.astype(cd))                   # (f2, fout)
    b1b = jnp.tile(b1.astype(jnp.float32), fold).reshape(1, f1)
    b2b = jnp.tile(b2.astype(jnp.float32), fold).reshape(1, f2)
    b3b = jnp.tile(b3.astype(jnp.float32), fold).reshape(1, fout)

    grid = (slab_rows_pad // tile_rows_eff,)

    itemsize = jnp.dtype(cd).itemsize
    cost = pl.CostEstimate(
        flops=2 * B_pad * (in_channels * h1 + h1 * h2 + h2 * out_size),
        transcendentals=0,
        bytes_accessed=(slab_rows_pad * fin * itemsize
                        + (fin * f1 + f1 * f2 + f2 * fout) * itemsize
                        + (f1 + f2 + fout) * 4
                        + slab_rows_pad * fout * 4),
    )

    out_slab = pl.pallas_call(
        _mlp_kernel,
        out_shape=jax.ShapeDtypeStruct((slab_rows_pad, fout), jnp.float32),
        grid_spec=pltpu.PrefetchScalarGridSpec(
            num_scalar_prefetch=0,
            grid=grid,
            in_specs=[
                pl.BlockSpec((tile_rows_eff, fin), lambda i: (i, 0)),  # x slab tile
                pl.BlockSpec((fin, f1), lambda i: (0, 0)),             # W1 (resident)
                pl.BlockSpec((1, f1), lambda i: (0, 0)),               # b1
                pl.BlockSpec((f1, f2), lambda i: (0, 0)),              # W2 (resident)
                pl.BlockSpec((1, f2), lambda i: (0, 0)),               # b2
                pl.BlockSpec((f2, fout), lambda i: (0, 0)),            # W3 (resident)
                pl.BlockSpec((1, fout), lambda i: (0, 0)),             # b3
            ],
            out_specs=pl.BlockSpec((tile_rows_eff, fout), lambda i: (i, 0)),
        ),
        compiler_params=pltpu.CompilerParams(
            dimension_semantics=("parallel",),
        ),
        cost_estimate=cost,
    )(x_slab, w1b, b1b, w2b, b2b, w3b, b3b)

    out = out_slab.reshape(B_pad, out_size)
    if B_pad != B:
        out = out[:B]
    return out.reshape(*lead, out_size)


def init_mlp_encoder_params(key, in_channels, output_size):
    """Deterministic init mirroring PyTorch nn.Linear default (U(-1/sqrt(fan_in), +))."""
    h1 = output_size // 4
    h2 = output_size // 2
    dims = [(in_channels, h1), (h1, h2), (h2, output_size)]
    params = []
    for (fan_in, fan_out) in dims:
        key, kw, kb = jax.random.split(key, 3)
        bound = 1.0 / jnp.sqrt(fan_in)
        w = jax.random.uniform(kw, (fan_in, fan_out), jnp.float32, -bound, bound)
        b = jax.random.uniform(kb, (fan_out,), jnp.float32, -bound, bound)
        params += [w, b]
    return tuple(params)


def mlp_encoder_ref(x, params):
    w1, b1, w2, b2, w3, b3 = params
    h = jnp.maximum(x @ w1 + b1, 0.0)
    h = jnp.maximum(h @ w2 + b2, 0.0)
    return jnp.maximum(h @ w3 + b3, 0.0)


if __name__ == "__main__":
    in_channels = 16
    output_size = 64   # hidden sizes: 16, 32, 64

    key = jax.random.PRNGKey(0)
    kx, kp = jax.random.split(key)

    # x: (batch=2, seq=32, in_channels=16) -> flattened to 64 logical rows
    x = jax.random.normal(kx, (2, 32, in_channels), dtype=jnp.float32)
    params = init_mlp_encoder_params(kp, in_channels, output_size)

    out = mlp_encoder(x, params)
    out = jax.block_until_ready(out)

    ref = mlp_encoder_ref(x, params)
    assert out.shape == (2, 32, output_size), out.shape
    assert jnp.allclose(out, ref, atol=1e-5, rtol=1e-5), "mismatch vs JAX reference"

    # Also exercise a non-divisible batch to check the padding path.
    x2 = jax.random.normal(kx, (3, 37, in_channels), dtype=jnp.float32)
    out2 = jax.block_until_ready(mlp_encoder(x2, params))
    assert jnp.allclose(out2, mlp_encoder_ref(x2, params), atol=1e-5, rtol=1e-5)

    print("KERNEL_OK")
</pallas_src>

<mosaic_0001>
module attributes {stable_mosaic.version = 11 : i64} {
  func.func @_mlp_kernel(%arg0: i32, %arg1: memref<8x128xf32, #tpu.memory_space<vmem>>, %arg2: memref<128x128xf32, #tpu.memory_space<vmem>>, %arg3: memref<1x128xf32, #tpu.memory_space<vmem>>, %arg4: memref<128x256xf32, #tpu.memory_space<vmem>>, %arg5: memref<1x256xf32, #tpu.memory_space<vmem>>, %arg6: memref<256x512xf32, #tpu.memory_space<vmem>>, %arg7: memref<1x512xf32, #tpu.memory_space<vmem>>, %arg8: memref<8x512xf32, #tpu.memory_space<vmem>>) attributes {dimension_semantics = [#tpu.dimension_semantics<parallel>], iteration_bounds = array<i64: 1>, scalar_prefetch = 0 : i64, scratch_operands = 0 : i64, tpu.core_type = #tpu.core_type<tc>, window_params = [{transform_indices = @transform_0, window_bounds = array<i64: 8, 128>}, {pipeline_mode = #tpu.pipeline_mode<synchronous>, transform_indices = @transform_1, window_bounds = array<i64: 128, 128>}, {pipeline_mode = #tpu.pipeline_mode<synchronous>, transform_indices = @transform_2, window_bounds = array<i64: 1, 128>}, {pipeline_mode = #tpu.pipeline_mode<synchronous>, transform_indices = @transform_3, window_bounds = array<i64: 128, 256>}, {pipeline_mode = #tpu.pipeline_mode<synchronous>, transform_indices = @transform_4, window_bounds = array<i64: 1, 256>}, {pipeline_mode = #tpu.pipeline_mode<synchronous>, transform_indices = @transform_5, window_bounds = array<i64: 256, 512>}, {pipeline_mode = #tpu.pipeline_mode<synchronous>, transform_indices = @transform_6, window_bounds = array<i64: 1, 512>}, {transform_indices = @transform_7, window_bounds = array<i64: 8, 512>}]} {
    %c0 = arith.constant 0 : index
    %c0_0 = arith.constant 0 : index
    %0 = vector.load %arg1[%c0, %c0_0] : memref<8x128xf32, #tpu.memory_space<vmem>>, vector<8x128xf32>
    %c0_1 = arith.constant 0 : index
    %c0_2 = arith.constant 0 : index
    %1 = vector.load %arg2[%c0_1, %c0_2] : memref<128x128xf32, #tpu.memory_space<vmem>>, vector<128x128xf32>
    %cst = arith.constant dense<0.000000e+00> : vector<8x128xf32>
    %2 = tpu.matmul %0, %1, %cst {dimension_numbers = #tpu.dot_dimension_numbers<[1], [0], [0], [1], [0, 0, 1, 1], [], []>} : vector<8x128xf32>, vector<128x128xf32>, vector<8x128xf32> -> vector<8x128xf32>
    %c0_3 = arith.constant 0 : index
    %c0_4 = arith.constant 0 : index
    %3 = vector.load %arg3[%c0_3, %c0_4] : memref<1x128xf32, #tpu.memory_space<vmem>>, vector<1x128xf32>
    %4 = vector.broadcast %3 : vector<1x128xf32> to vector<8x128xf32>
    %5 = arith.addf %2, %4 : vector<8x128xf32>
    %cst_5 = arith.constant 0.000000e+00 : f32
    %6 = vector.broadcast %cst_5 : f32 to vector<8x128xf32>
    %7 = arith.maximumf %5, %6 : vector<8x128xf32>
    %c0_6 = arith.constant 0 : index
    %c0_7 = arith.constant 0 : index
    %8 = vector.load %arg4[%c0_6, %c0_7] : memref<128x256xf32, #tpu.memory_space<vmem>>, vector<128x256xf32>
    %cst_8 = arith.constant dense<0.000000e+00> : vector<8x256xf32>
    %9 = tpu.matmul %7, %8, %cst_8 {dimension_numbers = #tpu.dot_dimension_numbers<[1], [0], [0], [1], [0, 0, 1, 1], [], []>} : vector<8x128xf32>, vector<128x256xf32>, vector<8x256xf32> -> vector<8x256xf32>
    %c0_9 = arith.constant 0 : index
    %c0_10 = arith.constant 0 : index
    %10 = vector.load %arg5[%c0_9, %c0_10] : memref<1x256xf32, #tpu.memory_space<vmem>>, vector<1x256xf32>
    %11 = vector.broadcast %10 : vector<1x256xf32> to vector<8x256xf32>
    %12 = arith.addf %9, %11 : vector<8x256xf32>
    %cst_11 = arith.constant 0.000000e+00 : f32
    %13 = vector.broadcast %cst_11 : f32 to vector<8x256xf32>
    %14 = arith.maximumf %12, %13 : vector<8x256xf32>
    %c0_12 = arith.constant 0 : index
    %c0_13 = arith.constant 0 : index
    %15 = vector.load %arg6[%c0_12, %c0_13] : memref<256x512xf32, #tpu.memory_space<vmem>>, vector<256x512xf32>
    %cst_14 = arith.constant dense<0.000000e+00> : vector<8x512xf32>
    %16 = tpu.matmul %14, %15, %cst_14 {dimension_numbers = #tpu.dot_dimension_numbers<[1], [0], [0], [1], [0, 0, 1, 1], [], []>} : vector<8x256xf32>, vector<256x512xf32>, vector<8x512xf32> -> vector<8x512xf32>
    %c0_15 = arith.constant 0 : index
    %c0_16 = arith.constant 0 : index
    %17 = vector.load %arg7[%c0_15, %c0_16] : memref<1x512xf32, #tpu.memory_space<vmem>>, vector<1x512xf32>
    %18 = vector.broadcast %17 : vector<1x512xf32> to vector<8x512xf32>
    %19 = arith.addf %16, %18 : vector<8x512xf32>
    %cst_17 = arith.constant 0.000000e+00 : f32
    %20 = vector.broadcast %cst_17 : f32 to vector<8x512xf32>
    %21 = arith.maximumf %19, %20 : vector<8x512xf32>
    %c0_18 = arith.constant 0 : index
    %c0_19 = arith.constant 0 : index
    %22 = vector.load %arg8[%c0_18, %c0_19] : memref<8x512xf32, #tpu.memory_space<vmem>>, vector<8x512xf32>
    tpu.vector_store %arg8[%c0_18, %c0_19], %21 {strides = array<i32>} : memref<8x512xf32, #tpu.memory_space<vmem>>, vector<8x512xf32>,
    return
  }
  func.func @transform_0(%arg0: i32) -> (i32, i32) {
    %c0_i32 = arith.constant 0 : i32
    %c0_i32_0 = arith.constant 0 : i32
    return %arg0, %c0_i32 : i32, i32
  }
  func.func @transform_1(%arg0: i32) -> (i32, i32) {
    %c0_i32 = arith.constant 0 : i32
    %c0_i32_0 = arith.constant 0 : i32
    %c0_i32_1 = arith.constant 0 : i32
    return %c0_i32, %c0_i32_0 : i32, i32
  }
  func.func @transform_2(%arg0: i32) -> (i32, i32) {
    %c0_i32 = arith.constant 0 : i32
    %c0_i32_0 = arith.constant 0 : i32
    %c0_i32_1 = arith.constant 0 : i32
    return %c0_i32, %c0_i32_0 : i32, i32
  }
  func.func @transform_3(%arg0: i32) -> (i32, i32) {
    %c0_i32 = arith.constant 0 : i32
    %c0_i32_0 = arith.constant 0 : i32
    %c0_i32_1 = arith.constant 0 : i32
    return %c0_i32, %c0_i32_0 : i32, i32
  }
  func.func @transform_4(%arg0: i32) -> (i32, i32) {
    %c0_i32 = arith.constant 0 : i32
    %c0_i32_0 = arith.constant 0 : i32
    %c0_i32_1 = arith.constant 0 : i32
    return %c0_i32, %c0_i32_0 : i32, i32
  }
  func.func @transform_5(%arg0: i32) -> (i32, i32) {
    %c0_i32 = arith.constant 0 : i32
    %c0_i32_0 = arith.constant 0 : i32
    %c0_i32_1 = arith.constant 0 : i32
    return %c0_i32, %c0_i32_0 : i32, i32
  }
  func.func @transform_6(%arg0: i32) -> (i32, i32) {
    %c0_i32 = arith.constant 0 : i32
    %c0_i32_0 = arith.constant 0 : i32
    %c0_i32_1 = arith.constant 0 : i32
    return %c0_i32, %c0_i32_0 : i32, i32
  }
  func.func @transform_7(%arg0: i32) -> (i32, i32) {
    %c0_i32 = arith.constant 0 : i32
    %c0_i32_0 = arith.constant 0 : i32
    return %arg0, %c0_i32 : i32, i32
  }
}

</mosaic_0001>

<bundles_post_ra>
// kernel: tile.28
= control target key start
LH: loop header
LB: loop body
LE: loop exit
PB: predicated region body
PF: predicated region fallthrough
CT: control target
= control target key end

     0   :  { %s22_s0 = inlined_call_operand.vmem [shape: f32[64], index: 0, kind: input, shape index: {}]   ;;  %s23_s1 = inlined_call_operand.vmem [shape: f32[8,64], index: 1, kind: output, shape index: {}]  }
   0x1   :  { %v4_v0 = vld [vmem:[%s22_s0] ss:$0 sm:$0xff] }
   0x2   :  { %5 = vst [vmem:[%s23_s1] sm:$0xff] %v4_v0 }

// kernel: tile.29
= control target key start
LH: loop header
LB: loop body
LE: loop exit
PB: predicated region body
PF: predicated region fallthrough
CT: control target
= control target key end

     0   :  { %vm3_vm0 = vcmask 523264   ;;  %s46_s8 = smov 64   ;;  %vm9_vm1 = vcmask 1048064   ;;  %s75_s0 = inlined_call_operand.vmem [shape: f32[8,64], index: 0, kind: input, shape index: {}]   ;;  %s76_s1 = inlined_call_operand.vmem [shape: f32[1,512], index: 1, kind: output, shape index: {}]  }
   0x1   :  { %v41_v0 = vld [vmem:[%s75_s0 + $0x1] ss:$2 sm:$0xf]   ;;  %v2_v1 = vld [vmem:[%s75_s0] ss:$2 sm:$0xf]  }
   0x2   :  { %7 = vrot.lane.b32.xlu0 %v41_v0, %s46_s8  ;;  %4 = vst.msk [vmem:[#allocation0] ss:$8 sm:$0xf] %vm3_vm0, %v2_v1  }
  0x74   :  { %v8_v2 = vpop.permute.xlu0 %7  }
  0x75   :  { %10 = vst.msk [vmem:[#allocation0] ss:$8 sm:$0xf] %vm9_vm1, %v8_v2  }
  0x7c   :  { %v15_v3 = vld [vmem:[#allocation0] sm:$0x1]  ;;  %v20_v4 = vld [vmem:[#allocation0 + $0x8] sm:$0x1]  ;;  %v26_v5 = vld [vmem:[#allocation0 + $0x10] sm:$0x1] }
  0x7d   :  { %18 = vst [vmem:[%s76_s1] sm:$0x1] %v15_v3  ;;  %42 = vst [vmem:[%s76_s1 + $0x1] sm:$0x1] %v20_v4  ;;  %v33_v6 = vld [vmem:[#allocation0 + $0x18] sm:$0x1] }
  0x7e   :  { %43 = vst [vmem:[%s76_s1 + $0x2] sm:$0x1] %v26_v5  ;;  %44 = vst [vmem:[%s76_s1 + $0x3] sm:$0x1] %v33_v6 }

// kernel: tile.23
= control target key start
LH: loop header
LB: loop body
LE: loop exit
PB: predicated region body
PF: predicated region fallthrough
CT: control target
= control target key end

     0   :  { %s22_s0 = inlined_call_operand.vmem [shape: f32[32], index: 0, kind: input, shape index: {}]   ;;  %s23_s1 = inlined_call_operand.vmem [shape: f32[8,32], index: 1, kind: output, shape index: {}]  }
   0x1   :  { %v4_v0 = vld [vmem:[%s22_s0] ss:$0 sm:$0xff] }
   0x2   :  { %5 = vst [vmem:[%s23_s1] sm:$0xff] %v4_v0 }

// kernel: tile.24
= control target key start
LH: loop header
LB: loop body
LE: loop exit
PB: predicated region body
PF: predicated region fallthrough
CT: control target
= control target key end

     0   :  { %s7_s6 = smov 3  ;;  %s14_s9 = smov 3  ;;  %vm4_vm0 = vcmask 261120   ;;  %vm11_vm1 = vcmask 1048320   ;;  %vm18_vm2 = vcmask 785920   ;;  %vm25_vm3 = vcmask 523520   ;;  %s79_s0 = inlined_call_operand.vmem [shape: f32[8,32], index: 0, kind: input, shape index: {}]   ;;  %s80_s1 = inlined_call_operand.vmem [shape: f32[1,256], index: 1, kind: output, shape index: {}]  }
   0x1   :  { %v41_v0 = vld [vmem:[%s79_s0 + $0x3] ss:$4 sm:%s7_s6]   ;;  %s48_s10 = smov 96   ;;  %s21_s11 = smov 3  ;;  %v42_v1 = vld [vmem:[%s79_s0 + $0x2] ss:$4 sm:%s14_s9]  }
   0x2   :  { %9 = vrot.lane.b32.xlu0 %v41_v0, %s48_s10  ;;  %v43_v2 = vld [vmem:[%s79_s0 + $0x1] ss:$4 sm:%s21_s11]   ;;  %s2_s16 = smov 3  ;;  %s49_s17 = smov 32  }
   0x3   :  { %23 = vrot.lane.b32.xlu1 %v43_v2, %s49_s17  ;;  %v3_v3 = vld [vmem:[%s79_s0] ss:$4 sm:%s2_s16]   ;;  %s50_s0 = smov 64  }
   0x4   :  { %5 = vst.msk [vmem:[#allocation0] ss:$8 sm:$0x3] %vm4_vm0, %v3_v3  }
   0x6   :  { %16 = vrot.lane.b32.xlu0 %v42_v1, %s50_s0 }
  0x74   :  { %v10_v4 = vpop.permute.xlu0 %9  }
  0x75   :  { %12 = vst.msk [vmem:[#allocation0] ss:$8 sm:$0x3] %vm11_vm1, %v10_v4   ;;  %v24_v5 = vpop.permute.xlu1 %23  }
  0x78   :  { %v17_v6 = vpop.permute.xlu0 %16  }
  0x79   :  { %19 = vst.msk [vmem:[#allocation0] ss:$8 sm:$0x3] %vm18_vm2, %v17_v6  }
  0x7a   :  { %26 = vst.msk [vmem:[#allocation0] ss:$8 sm:$0x3] %vm25_vm3, %v24_v5  }
  0x81   :  { %v31_v7 = vld [vmem:[#allocation0] sm:$0x1]  ;;  %v36_v8 = vld [vmem:[#allocation0 + $0x8] sm:$0x1] }
  0x82   :  { %34 = vst [vmem:[%s80_s1] sm:$0x1] %v31_v7  ;;  %44 = vst [vmem:[%s80_s1 + $0x1] sm:$0x1] %v36_v8 }

// kernel: tile.18
= control target key start
LH: loop header
LB: loop body
LE: loop exit
PB: predicated region body
PF: predicated region fallthrough
CT: control target
= control target key end

     0   :  { %s22_s0 = inlined_call_operand.vmem [shape: f32[16], index: 0, kind: input, shape index: {}]   ;;  %s23_s1 = inlined_call_operand.vmem [shape: f32[8,16], index: 1, kind: output, shape index: {}]  }
   0x1   :  { %v4_v0 = vld [vmem:[%s22_s0] ss:$0 sm:$0xff] }
   0x2   :  { %5 = vst [vmem:[%s23_s1] sm:$0xff] %v4_v0 }

// kernel: tile.19
= control target key start
LH: loop header
LB: loop body
LE: loop exit
PB: predicated region body
PF: predicated region fallthrough
CT: control target
= control target key end

     0   :  { %s69_s10 = smov 112   ;;  %s70_s11 = smov 80   ;;  %vm3_vm0 = vcmask 130048   ;;  %vm9_vm1 = vcmask 1048448   ;;  %vm15_vm2 = vcmask 917248   ;;  %vm21_vm3 = vcmask 786048   ;;  %s113_s0 = inlined_call_operand.vmem [shape: f32[8,16], index: 0, kind: input, shape index: {}]   ;;  %s114_s1 = inlined_call_operand.vmem [shape: f32[1,128], index: 1, kind: output, shape index: {}]  }
   0x1   :  { %v55_v0 = vld [vmem:[%s113_s0 + $0x7] sm:$0x1]   ;;  %v57_v1 = vld [vmem:[%s113_s0 + $0x5] sm:$0x1]   ;;  %v56_v2 = vld [vmem:[%s113_s0 + $0x6] sm:$0x1]  }
   0x2   :  { %7 = vrot.lane.b32.xlu0 %v55_v0, %s69_s10  ;;  %19 = vrot.lane.b32.xlu1 %v57_v1, %s70_s11  ;;  %v58_v3 = vld [vmem:[%s113_s0 + $0x4] sm:$0x1]   ;;  %v2_v4 = vld [vmem:[%s113_s0] sm:$0x1]   ;;  %s71_s18 = smov 96   ;;  %s72_s19 = smov 64  }
   0x3   :  { %4 = vst.msk [vmem:[#allocation0] sm:$0x1] %vm3_vm0, %v2_v4   ;;  %v59_v5 = vld [vmem:[%s113_s0 + $0x3] sm:$0x1]   ;;  %v60_v6 = vld [vmem:[%s113_s0 + $0x2] sm:$0x1]  }
   0x4   :  { %s73_s24 = smov 48   ;;  %s74_s25 = smov 32   ;;  %v61_v7 = vld [vmem:[%s113_s0 + $0x1] sm:$0x1]   ;;  %vm27_vm4 = vcmask 654848   ;;  %vm33_vm5 = vcmask 523648  }
   0x5   :  { %s75_s0 = smov 16   ;;  %vm39_vm6 = vcmask 392448   ;;  %vm45_vm7 = vcmask 261248  }
   0x6   :  { %13 = vrot.lane.b32.xlu0 %v56_v2, %s71_s18  ;;  %25 = vrot.lane.b32.xlu1 %v58_v3, %s72_s19 }
   0xa   :  { %31 = vrot.lane.b32.xlu0 %v59_v5, %s73_s24  ;;  %37 = vrot.lane.b32.xlu1 %v60_v6, %s74_s25 }
   0xe   :  { %43 = vrot.lane.b32.xlu0 %v61_v7, %s75_s0 }
  0x74   :  { %v8_v8 = vpop.permute.xlu0 %7   ;;  %v20_v9 = vpop.permute.xlu1 %19  }
  0x75   :  { %10 = vst.msk [vmem:[#allocation0] sm:$0x1] %vm9_vm1, %v8_v8  }
  0x78   :  { %v14_v10 = vpop.permute.xlu0 %13   ;;  %v26_v11 = vpop.permute.xlu1 %25  }
  0x79   :  { %16 = vst.msk [vmem:[#allocation0] sm:$0x1] %vm15_vm2, %v14_v10  }
  0x7a   :  { %22 = vst.msk [vmem:[#allocation0] sm:$0x1] %vm21_vm3, %v20_v9  }
  0x7b   :  { %28 = vst.msk [vmem:[#allocation0] sm:$0x1] %vm27_vm4, %v26_v11  }
  0x7c   :  { %v32_v12 = vpop.permute.xlu0 %31   ;;  %v38_v13 = vpop.permute.xlu1 %37  }
  0x7d   :  { %34 = vst.msk [vmem:[#allocation0] sm:$0x1] %vm33_vm5, %v32_v12  }
  0x7e   :  { %40 = vst.msk [vmem:[#allocation0] sm:$0x1] %vm39_vm6, %v38_v13  }
  0x80   :  { %v44_v14 = vpop.permute.xlu0 %43  }
  0x81   :  { %46 = vst.msk [vmem:[#allocation0] sm:$0x1] %vm45_vm7, %v44_v14  }
  0x88   :  { %v51_v15 = vld [vmem:[#allocation0] sm:$0x1] }
  0x89   :  { %54 = vst [vmem:[%s114_s1] sm:$0x1] %v51_v15 }

// kernel: mlp_encoder.1
= control target key start
LH: loop header
LB: loop body
LE: loop exit
PB: predicated region body
PF: predicated region fallthrough
CT: control target
= control target key end

     0   :  { %v597_v0 = vmov 0.0   ;;  %vm598_vm0 = vmmov 0   ;;  %s1209_s1 = inlined_call_operand.vmem [shape: f32[128,128], index: 1, kind: input, shape index: {}]   ;;  %s1210_s3 = inlined_call_operand.vmem [shape: f32[128,256], index: 3, kind: input, shape index: {}]   ;;  %s1211_s0 = inlined_call_operand.vmem [shape: f32[8,128], index: 0, kind: input, shape index: {}]   ;;  %s1212_s5 = inlined_call_operand.vmem [shape: f32[256,512], index: 5, kind: input, shape index: {}]   ;;  %s1213_s2 = inlined_call_operand.vmem [shape: f32[1,128], index: 2, kind: input, shape index: {}]   ;;  %s1214_s4 = inlined_call_operand.vmem [shape: f32[1,256], index: 4, kind: input, shape index: {}]   ;;  %s1215_s6 = inlined_call_operand.vmem [shape: f32[1,512], index: 6, kind: input, shape index: {}]   ;;  %s1216_s7 = inlined_call_operand.vmem [shape: f32[8,512], index: 7, kind: output, shape index: {}]  }
   0x1   :  { %560 = vmatprep.subr.mxu0 %v597_v0  ;;  %v42_v1 = vld [vmem:[%s1209_s1 + $0x78] sm:$0xff]  ;;  %v41_v2 = vld [vmem:[%s1209_s1 + $0x70] sm:$0xff]  ;;  %592 = vmatprep.mubr.msk.f32.mxu0 %vm598_vm0, %v597_v0  ;;  %v40_v3 = vld [vmem:[%s1209_s1 + $0x68] sm:$0xff] }
   0x2   :  { %561 = vmatpush3.msra.mxu0 %v42_v1  ;;  %229 = vmatprep.mubr.f32.mxu1 %v597_v0  ;;  %v39_v4 = vld [vmem:[%s1209_s1 + $0x60] sm:$0xff]  ;;  %v38_v5 = vld [vmem:[%s1209_s1 + $0x58] sm:$0xff]  ;;  %v151_v7 = vld [vmem:[%s1210_s3 + $0xf0] sm:$0xff] }
   0x3   :  { %562 = vmatprep.subr.mxu0 %v597_v0  ;;  %v152_v6 = vld [vmem:[%s1210_s3 + $0xf8] sm:$0xff]  ;;  %v150_v8 = vld [vmem:[%s1210_s3 + $0xe8] sm:$0xff]  ;;  %v149_v9 = vld [vmem:[%s1210_s3 + $0xe0] sm:$0xff] }
   0x4   :  { %563 = vmatpush3.msra.mxu0 %v41_v2  ;;  %165 = vmatprep.subr.mxu1 %v152_v6  ;;  %v148_v10 = vld [vmem:[%s1210_s3 + $0xd8] sm:$0xff]  ;;  %v37_v11 = vld [vmem:[%s1209_s1 + $0x50] sm:$0xff]  ;;  %v146_v13 = vld [vmem:[%s1210_s3 + $0xc8] sm:$0xff] }
   0x5   :  { %564 = vmatprep.subr.mxu0 %v597_v0  ;;  %166 = vmatpush1.msra.mxu1 %v151_v7  ;;  %v147_v12 = vld [vmem:[%s1210_s3 + $0xd0] sm:$0xff]  ;;  %v36_v14 = vld [vmem:[%s1209_s1 + $0x48] sm:$0xff]  ;;  %v145_v15 = vld [vmem:[%s1210_s3 + $0xc0] sm:$0xff] }
   0x6   :  { %565 = vmatpush3.msra.mxu0 %v40_v3  ;;  %167 = vmatprep.subr.mxu1 %v150_v8  ;;  %v144_v16 = vld [vmem:[%s1210_s3 + $0xb8] sm:$0xff]  ;;  %v35_v17 = vld [vmem:[%s1209_s1 + $0x40] sm:$0xff]  ;;  %v143_v18 = vld [vmem:[%s1210_s3 + $0xb0] sm:$0xff] }
   0x7   :  { %566 = vmatprep.subr.mxu0 %v597_v0  ;;  %168 = vmatpush1.msra.mxu1 %v149_v9  ;;  %v142_v19 = vld [vmem:[%s1210_s3 + $0xa8] sm:$0xff]  ;;  %v34_v20 = vld [vmem:[%s1209_s1 + $0x38] sm:$0xff]  ;;  %v141_v21 = vld [vmem:[%s1210_s3 + $0xa0] sm:$0xff] }
   0x8   :  { %567 = vmatpush3.msra.mxu0 %v39_v4  ;;  %169 = vmatprep.subr.mxu1 %v148_v10  ;;  %v140_v22 = vld [vmem:[%s1210_s3 + $0x98] sm:$0xff]  ;;  %v33_v23 = vld [vmem:[%s1209_s1 + $0x30] sm:$0xff]  ;;  %v138_v25 = vld [vmem:[%s1210_s3 + $0x88] sm:$0xff] }
   0x9   :  { %568 = vmatprep.subr.mxu0 %v597_v0  ;;  %170 = vmatpush1.msra.mxu1 %v147_v12  ;;  %v139_v24 = vld [vmem:[%s1210_s3 + $0x90] sm:$0xff]  ;;  %v32_v26 = vld [vmem:[%s1209_s1 + $0x28] sm:$0xff]  ;;  %v137_v27 = vld [vmem:[%s1210_s3 + $0x80] sm:$0xff] }
   0xa   :  { %569 = vmatpush3.msra.mxu0 %v38_v5  ;;  %171 = vmatprep.subr.mxu1 %v146_v13  ;;  %v136_v28 = vld [vmem:[%s1210_s3 + $0x78] sm:$0xff]  ;;  %v31_v29 = vld [vmem:[%s1209_s1 + $0x20] sm:$0xff]  ;;  %v135_v30 = vld [vmem:[%s1210_s3 + $0x70] sm:$0xff] }
   0xb   :  { %570 = vmatprep.subr.mxu0 %v597_v0  ;;  %172 = vmatpush1.msra.mxu1 %v145_v15  ;;  %v134_v31 = vld [vmem:[%s1210_s3 + $0x68] sm:$0xff]  ;;  %v30_v32 = vld [vmem:[%s1209_s1 + $0x18] sm:$0xff]  ;;  %v133_v33 = vld [vmem:[%s1210_s3 + $0x60] sm:$0xff] }
   0xc   :  { %571 = vmatpush3.msra.mxu0 %v37_v11  ;;  %173 = vmatprep.subr.mxu1 %v144_v16  ;;  %v132_v34 = vld [vmem:[%s1210_s3 + $0x58] sm:$0xff]  ;;  %v29_v35 = vld [vmem:[%s1209_s1 + $0x10] sm:$0xff]  ;;  %v130_v37 = vld [vmem:[%s1210_s3 + $0x48] sm:$0xff] }
   0xd   :  { %572 = vmatprep.subr.mxu0 %v597_v0  ;;  %174 = vmatpush1.msra.mxu1 %v143_v18  ;;  %v131_v36 = vld [vmem:[%s1210_s3 + $0x50] sm:$0xff]  ;;  %v28_v38 = vld [vmem:[%s1209_s1 + $0x8] sm:$0xff]  ;;  %v129_v39 = vld [vmem:[%s1210_s3 + $0x40] sm:$0xff] }
   0xe   :  { %573 = vmatpush3.msra.mxu0 %v36_v14  ;;  %175 = vmatprep.subr.mxu1 %v142_v19  ;;  %v128_v40 = vld [vmem:[%s1210_s3 + $0x38] sm:$0xff]  ;;  %v27_v41 = vld [vmem:[%s1209_s1] sm:$0xff]  ;;  %v127_v42 = vld [vmem:[%s1210_s3 + $0x30] sm:$0xff] }
   0xf   :  { %574 = vmatprep.subr.mxu0 %v597_v0  ;;  %176 = vmatpush1.msra.mxu1 %v141_v21  ;;  %v26_v43 = vld [vmem:[%s1211_s0] sm:$0xff]  ;;  %v126_v44 = vld [vmem:[%s1210_s3 + $0x28] sm:$0xff]  ;;  %v124_v46 = vld [vmem:[%s1210_s3 + $0x18] sm:$0xff] }
  0x10   :  { %575 = vmatpush3.msra.mxu0 %v35_v17  ;;  %177 = vmatprep.subr.mxu1 %v140_v22  ;;  %v125_v45 = vld [vmem:[%s1210_s3 + $0x20] sm:$0xff]  ;;  %v123_v47 = vld [vmem:[%s1210_s3 + $0x10] sm:$0xff]  ;;  %v122_v48 = vld [vmem:[%s1210_s3 + $0x8] sm:$0xff] }
  0x11   :  { %576 = vmatprep.subr.mxu0 %v597_v0  ;;  %178 = vmatpush1.msra.mxu1 %v139_v24  ;;  %v121_v49 = vld [vmem:[%s1210_s3] sm:$0xff]  ;;  %v299_v50 = vld [vmem:[%s1212_s5 + $0x1e8] sm:$0xff]  ;;  %v301_v51 = vld [vmem:[%s1212_s5 + $0x1f8] sm:$0xff] }
  0x12   :  { %577 = vmatpush3.msra.mxu0 %v34_v20  ;;  %179 = vmatprep.subr.mxu1 %v138_v25  ;;  %v298_v52 = vld [vmem:[%s1212_s5 + $0x1e0] sm:$0xff]  ;;  %v295_v53 = vld [vmem:[%s1212_s5 + $0x1c8] sm:$0xff] }
  0x13   :  { %578 = vmatprep.subr.mxu0 %v597_v0  ;;  %180 = vmatpush1.msra.mxu1 %v137_v27  ;;  %v294_v54 = vld [vmem:[%s1212_s5 + $0x1c0] sm:$0xff]  ;;  %v291_v55 = vld [vmem:[%s1212_s5 + $0x1a8] sm:$0xff] }
  0x14   :  { %579 = vmatpush3.msra.mxu0 %v33_v23  ;;  %181 = vmatprep.subr.mxu1 %v136_v28  ;;  %v290_v56 = vld [vmem:[%s1212_s5 + $0x1a0] sm:$0xff]  ;;  %v287_v57 = vld [vmem:[%s1212_s5 + $0x188] sm:$0xff] }
  0x15   :  { %580 = vmatprep.subr.mxu0 %v597_v0  ;;  %182 = vmatpush1.msra.mxu1 %v135_v30  ;;  %v286_v58 = vld [vmem:[%s1212_s5 + $0x180] sm:$0xff]  ;;  %v283_v59 = vld [vmem:[%s1212_s5 + $0x168] sm:$0xff] }
  0x16   :  { %581 = vmatpush3.msra.mxu0 %v32_v26  ;;  %183 = vmatprep.subr.mxu1 %v134_v31  ;;  %v282_v60 = vld [vmem:[%s1212_s5 + $0x160] sm:$0xff]  ;;  %v279_v61 = vld [vmem:[%s1212_s5 + $0x148] sm:$0xff] }
  0x17   :  { %582 = vmatprep.subr.mxu0 %v597_v0  ;;  %184 = vmatpush1.msra.mxu1 %v133_v33  ;;  %v278_v62 = vld [vmem:[%s1212_s5 + $0x140] sm:$0xff]  ;;  %v275_v63 = vld [vmem:[%s1212_s5 + $0x128] sm:$0xff] }
  0x18   :  { %583 = vmatpush3.msra.mxu0 %v31_v29  ;;  %185 = vmatprep.subr.mxu1 %v132_v34  ;;  %v271_v1 = vld [vmem:[%s1212_s5 + $0x108] sm:$0xff]  ;;  %v270_v2 = vld [vmem:[%s1212_s5 + $0x100] sm:$0xff] }
  0x19   :  { %584 = vmatprep.subr.mxu0 %v597_v0  ;;  %186 = vmatpush1.msra.mxu1 %v131_v36  ;;  %v267_v3 = vld [vmem:[%s1212_s5 + $0xe8] sm:$0xff]  ;;  %v266_v4 = vld [vmem:[%s1212_s5 + $0xe0] sm:$0xff] }
  0x1a   :  { %585 = vmatpush3.msra.mxu0 %v30_v32  ;;  %187 = vmatprep.subr.mxu1 %v130_v37  ;;  %v263_v5 = vld [vmem:[%s1212_s5 + $0xc8] sm:$0xff]  ;;  %v262_v6 = vld [vmem:[%s1212_s5 + $0xc0] sm:$0xff] }
  0x1b   :  { %586 = vmatprep.subr.mxu0 %v597_v0  ;;  %188 = vmatpush1.msra.mxu1 %v129_v39  ;;  %v259_v7 = vld [vmem:[%s1212_s5 + $0xa8] sm:$0xff]  ;;  %v258_v8 = vld [vmem:[%s1212_s5 + $0xa0] sm:$0xff] }
  0x1c   :  { %587 = vmatpush3.msra.mxu0 %v29_v35  ;;  %189 = vmatprep.subr.mxu1 %v128_v40  ;;  %v255_v9 = vld [vmem:[%s1212_s5 + $0x88] sm:$0xff]  ;;  %v254_v10 = vld [vmem:[%s1212_s5 + $0x80] sm:$0xff] }
  0x1d   :  { %588 = vmatprep.subr.mxu0 %v597_v0  ;;  %190 = vmatpush1.msra.mxu1 %v127_v42  ;;  %v251_v11 = vld [vmem:[%s1212_s5 + $0x68] sm:$0xff]  ;;  %v250_v12 = vld [vmem:[%s1212_s5 + $0x60] sm:$0xff] }
  0x1e   :  { %589 = vmatpush3.msra.mxu0 %v28_v38  ;;  %191 = vmatprep.subr.mxu1 %v126_v44  ;;  %v247_v13 = vld [vmem:[%s1212_s5 + $0x48] sm:$0xff]  ;;  %v246_v14 = vld [vmem:[%s1212_s5 + $0x40] sm:$0xff] }
  0x1f   :  { %590 = vmatprep.subr.mxu0 %v597_v0  ;;  %192 = vmatpush1.msra.mxu1 %v125_v45  ;;  %v274_v0 = vld [vmem:[%s1212_s5 + $0x120] sm:$0xff]  ;;  %v243_v15 = vld [vmem:[%s1212_s5 + $0x28] sm:$0xff] }
  0x20   :  { %591 = vmatpush3.msra.mxu0 %v27_v41  ;;  %193 = vmatprep.subr.mxu1 %v124_v46  ;;  %v242_v16 = vld [vmem:[%s1212_s5 + $0x20] sm:$0xff]  ;;  %v239_v17 = vld [vmem:[%s1212_s5 + $0x8] sm:$0xff] }
  0x21   :  { %593 = vmatmul.mubr.f32.vlgmr.msra.gmra.mxu0 %v26_v43  ;;  %194 = vmatpush1.msra.mxu1 %v123_v47  ;;  %v238_v18 = vld [vmem:[%s1212_s5] sm:$0xff]  ;;  %v363_v19 = vld [vmem:[%s1212_s5 + $0x3e8] sm:$0xff] }
  0x22   :  { %195 = vmatprep.subr.mxu1 %v122_v48  ;;  %388 = vmatprep.subr.mxu0 %v299_v50  ;;  %v362_v20 = vld [vmem:[%s1212_s5 + $0x3e0] sm:$0xff]  ;;  %v359_v21 = vld [vmem:[%s1212_s5 + $0x3c8] sm:$0xff]  ;;  %v300_v48 = vld [vmem:[%s1212_s5 + $0x1f0] sm:$0xff] }
  0x23   :  { %196 = vmatpush1.msra.mxu1 %v121_v49  ;;  %389 = vmatpush1.msra.mxu0 %v298_v52  ;;  %v358_v22 = vld [vmem:[%s1212_s5 + $0x3c0] sm:$0xff]  ;;  %v355_v23 = vld [vmem:[%s1212_s5 + $0x3a8] sm:$0xff]  ;;  %v297_v49 = vld [vmem:[%s1212_s5 + $0x1d8] sm:$0xff] }
  0x24   :  { %459 = vmatprep.subr.mxu1 %v301_v51  ;;  %390 = vmatprep.subr.mxu0 %v295_v53  ;;  %v354_v24 = vld [vmem:[%s1212_s5 + $0x3a0] sm:$0xff]  ;;  %v351_v25 = vld [vmem:[%s1212_s5 + $0x388] sm:$0xff]  ;;  %v296_v50 = vld [vmem:[%s1212_s5 + $0x1d0] sm:$0xff] }
  0x25   :  { %391 = vmatpush1.msra.mxu0 %v294_v54  ;;  %v350_v26 = vld [vmem:[%s1212_s5 + $0x380] sm:$0xff]  ;;  %v347_v27 = vld [vmem:[%s1212_s5 + $0x368] sm:$0xff]  ;;  %v293_v51 = vld [vmem:[%s1212_s5 + $0x1b8] sm:$0xff] }
  0x26   :  { %392 = vmatprep.subr.mxu0 %v291_v55  ;;  %v346_v28 = vld [vmem:[%s1212_s5 + $0x360] sm:$0xff]  ;;  %v343_v29 = vld [vmem:[%s1212_s5 + $0x348] sm:$0xff]  ;;  %v292_v52 = vld [vmem:[%s1212_s5 + $0x1b0] sm:$0xff] }
  0x27   :  { %393 = vmatpush1.msra.mxu0 %v290_v56  ;;  %v342_v30 = vld [vmem:[%s1212_s5 + $0x340] sm:$0xff]  ;;  %v339_v31 = vld [vmem:[%s1212_s5 + $0x328] sm:$0xff]  ;;  %v289_v53 = vld [vmem:[%s1212_s5 + $0x198] sm:$0xff] }
  0x28   :  { %394 = vmatprep.subr.mxu0 %v287_v57  ;;  %v338_v32 = vld [vmem:[%s1212_s5 + $0x320] sm:$0xff]  ;;  %v335_v33 = vld [vmem:[%s1212_s5 + $0x308] sm:$0xff]  ;;  %v288_v54 = vld [vmem:[%s1212_s5 + $0x190] sm:$0xff] }
  0x29   :  { %395 = vmatpush1.msra.mxu0 %v286_v58  ;;  %v334_v34 = vld [vmem:[%s1212_s5 + $0x300] sm:$0xff]  ;;  %v331_v35 = vld [vmem:[%s1212_s5 + $0x2e8] sm:$0xff]  ;;  %v285_v55 = vld [vmem:[%s1212_s5 + $0x178] sm:$0xff] }
  0x2a   :  { %396 = vmatprep.subr.mxu0 %v283_v59  ;;  %v330_v36 = vld [vmem:[%s1212_s5 + $0x2e0] sm:$0xff]  ;;  %v327_v37 = vld [vmem:[%s1212_s5 + $0x2c8] sm:$0xff]  ;;  %v284_v56 = vld [vmem:[%s1212_s5 + $0x170] sm:$0xff] }
  0x2b   :  { %397 = vmatpush1.msra.mxu0 %v282_v60  ;;  %v326_v38 = vld [vmem:[%s1212_s5 + $0x2c0] sm:$0xff]  ;;  %v323_v39 = vld [vmem:[%s1212_s5 + $0x2a8] sm:$0xff]  ;;  %v281_v57 = vld [vmem:[%s1212_s5 + $0x158] sm:$0xff] }
  0x2c   :  { %398 = vmatprep.subr.mxu0 %v279_v61  ;;  %v322_v40 = vld [vmem:[%s1212_s5 + $0x2a0] sm:$0xff]  ;;  %v319_v41 = vld [vmem:[%s1212_s5 + $0x288] sm:$0xff]  ;;  %v280_v58 = vld [vmem:[%s1212_s5 + $0x150] sm:$0xff] }
  0x2d   :  { %399 = vmatpush1.msra.mxu0 %v278_v62  ;;  %v318_v42 = vld [vmem:[%s1212_s5 + $0x280] sm:$0xff]  ;;  %v277_v59 = vld [vmem:[%s1212_s5 + $0x138] sm:$0xff]  ;;  %v276_v60 = vld [vmem:[%s1212_s5 + $0x130] sm:$0xff] }
  0x2e   :  { %400 = vmatprep.subr.mxu0 %v275_v63  ;;  %v542_v43 = vld [vmem:[%s1213_s2] ss:$0 sm:$0xff]  ;;  %v273_v61 = vld [vmem:[%s1212_s5 + $0x118] sm:$0xff]  ;;  %v272_v62 = vld [vmem:[%s1212_s5 + $0x110] sm:$0xff] }
  0x2f   :  { %401 = vmatpush1.msra.mxu0 %v274_v0  ;;  %v269_v63 = vld [vmem:[%s1212_s5 + $0xf8] sm:$0xff]  ;;  %v268_v0 = vld [vmem:[%s1212_s5 + $0xf0] sm:$0xff] }
  0x30   :  { %402 = vmatprep.subr.mxu0 %v271_v1  ;;  %v265_v1 = vld [vmem:[%s1212_s5 + $0xd8] sm:$0xff] }
  0x31   :  { %403 = vmatpush1.msra.mxu0 %v270_v2  ;;  %v264_v2 = vld [vmem:[%s1212_s5 + $0xd0] sm:$0xff] }
  0x32   :  { %404 = vmatprep.subr.mxu0 %v267_v3  ;;  %v261_v3 = vld [vmem:[%s1212_s5 + $0xb8] sm:$0xff] }
  0x33   :  { %405 = vmatpush1.msra.mxu0 %v266_v4  ;;  %v260_v4 = vld [vmem:[%s1212_s5 + $0xb0] sm:$0xff] }
  0x34   :  { %406 = vmatprep.subr.mxu0 %v263_v5  ;;  %v257_v5 = vld [vmem:[%s1212_s5 + $0x98] sm:$0xff] }
  0x35   :  { %407 = vmatpush1.msra.mxu0 %v262_v6  ;;  %v256_v6 = vld [vmem:[%s1212_s5 + $0x90] sm:$0xff] }
  0x36   :  { %408 = vmatprep.subr.mxu0 %v259_v7  ;;  %v253_v7 = vld [vmem:[%s1212_s5 + $0x78] sm:$0xff] }
  0x37   :  { %409 = vmatpush1.msra.mxu0 %v258_v8  ;;  %v252_v8 = vld [vmem:[%s1212_s5 + $0x70] sm:$0xff] }
  0x38   :  { %410 = vmatprep.subr.mxu0 %v255_v9  ;;  %v249_v9 = vld [vmem:[%s1212_s5 + $0x58] sm:$0xff] }
  0x39   :  { %411 = vmatpush1.msra.mxu0 %v254_v10  ;;  %v248_v10 = vld [vmem:[%s1212_s5 + $0x50] sm:$0xff] }
  0x3a   :  { %412 = vmatprep.subr.mxu0 %v251_v11  ;;  %v245_v11 = vld [vmem:[%s1212_s5 + $0x38] sm:$0xff] }
  0x3b   :  { %413 = vmatpush1.msra.mxu0 %v250_v12  ;;  %v244_v12 = vld [vmem:[%s1212_s5 + $0x30] sm:$0xff] }
  0x3c   :  { %414 = vmatprep.subr.mxu0 %v247_v13  ;;  %v241_v13 = vld [vmem:[%s1212_s5 + $0x18] sm:$0xff] }
  0x3d   :  { %415 = vmatpush1.msra.mxu0 %v246_v14  ;;  %v240_v14 = vld [vmem:[%s1212_s5 + $0x10] sm:$0xff] }
  0x3e   :  { %416 = vmatprep.subr.mxu0 %v243_v15  ;;  %v365_v15 = vld [vmem:[%s1212_s5 + $0x3f8] sm:$0xff] }
  0x3f   :  { %417 = vmatpush1.msra.mxu0 %v242_v16  ;;  %v364_v16 = vld [vmem:[%s1212_s5 + $0x3f0] sm:$0xff] }
  0x40   :  { %418 = vmatprep.subr.mxu0 %v239_v17  ;;  %v361_v17 = vld [vmem:[%s1212_s5 + $0x3d8] sm:$0xff] }
  0x41   :  { %419 = vmatpush1.msra.mxu0 %v238_v18  ;;  %v360_v18 = vld [vmem:[%s1212_s5 + $0x3d0] sm:$0xff] }
  0x42   :  { %420 = vmatprep.subr.mxu0 %v363_v19  ;;  %v357_v19 = vld [vmem:[%s1212_s5 + $0x3b8] sm:$0xff] }
  0x43   :  { %421 = vmatpush2.msra.mxu0 %v362_v20  ;;  %v356_v20 = vld [vmem:[%s1212_s5 + $0x3b0] sm:$0xff] }
  0x44   :  { %422 = vmatprep.subr.mxu0 %v359_v21  ;;  %v353_v21 = vld [vmem:[%s1212_s5 + $0x398] sm:$0xff] }
  0x45   :  { %423 = vmatpush2.msra.mxu0 %v358_v22  ;;  %v352_v22 = vld [vmem:[%s1212_s5 + $0x390] sm:$0xff] }
  0x46   :  { %424 = vmatprep.subr.mxu0 %v355_v23  ;;  %v349_v23 = vld [vmem:[%s1212_s5 + $0x378] sm:$0xff] }
  0x47   :  { %425 = vmatpush2.msra.mxu0 %v354_v24  ;;  %v348_v24 = vld [vmem:[%s1212_s5 + $0x370] sm:$0xff] }
  0x48   :  { %426 = vmatprep.subr.mxu0 %v351_v25  ;;  %v345_v25 = vld [vmem:[%s1212_s5 + $0x358] sm:$0xff] }
  0x49   :  { %427 = vmatpush2.msra.mxu0 %v350_v26  ;;  %v344_v26 = vld [vmem:[%s1212_s5 + $0x350] sm:$0xff] }
  0x4a   :  { %428 = vmatprep.subr.mxu0 %v347_v27  ;;  %v341_v27 = vld [vmem:[%s1212_s5 + $0x338] sm:$0xff] }
  0x4b   :  { %429 = vmatpush2.msra.mxu0 %v346_v28  ;;  %v340_v28 = vld [vmem:[%s1212_s5 + $0x330] sm:$0xff] }
  0x4c   :  { %430 = vmatprep.subr.mxu0 %v343_v29  ;;  %v337_v29 = vld [vmem:[%s1212_s5 + $0x318] sm:$0xff] }
  0x4d   :  { %431 = vmatpush2.msra.mxu0 %v342_v30  ;;  %v336_v30 = vld [vmem:[%s1212_s5 + $0x310] sm:$0xff] }
  0x4e   :  { %432 = vmatprep.subr.mxu0 %v339_v31  ;;  %v333_v31 = vld [vmem:[%s1212_s5 + $0x2f8] sm:$0xff] }
  0x4f   :  { %433 = vmatpush2.msra.mxu0 %v338_v32  ;;  %v332_v32 = vld [vmem:[%s1212_s5 + $0x2f0] sm:$0xff] }
  0x50   :  { %434 = vmatprep.subr.mxu0 %v335_v33  ;;  %v329_v33 = vld [vmem:[%s1212_s5 + $0x2d8] sm:$0xff] }
  0x51   :  { %435 = vmatpush2.msra.mxu0 %v334_v34  ;;  %v328_v34 = vld [vmem:[%s1212_s5 + $0x2d0] sm:$0xff] }
  0x52   :  { %436 = vmatprep.subr.mxu0 %v331_v35  ;;  %v325_v35 = vld [vmem:[%s1212_s5 + $0x2b8] sm:$0xff] }
  0x53   :  { %437 = vmatpush2.msra.mxu0 %v330_v36  ;;  %v324_v36 = vld [vmem:[%s1212_s5 + $0x2b0] sm:$0xff] }
  0x54   :  { %438 = vmatprep.subr.mxu0 %v327_v37  ;;  %v321_v37 = vld [vmem:[%s1212_s5 + $0x298] sm:$0xff] }
  0x55   :  { %439 = vmatpush2.msra.mxu0 %v326_v38  ;;  %v320_v38 = vld [vmem:[%s1212_s5 + $0x290] sm:$0xff] }
  0x56   :  { %440 = vmatprep.subr.mxu0 %v323_v39  ;;  %v315_v39 = vld [vmem:[%s1212_s5 + $0x268] sm:$0xff] }
  0x57   :  { %441 = vmatpush2.msra.mxu0 %v322_v40  ;;  %v317_v40 = vld [vmem:[%s1212_s5 + $0x278] sm:$0xff] }
  0x58   :  { %442 = vmatprep.subr.mxu0 %v319_v41  ;;  %v314_v41 = vld [vmem:[%s1212_s5 + $0x260] sm:$0xff] }
  0x59   :  { %443 = vmatpush2.msra.mxu0 %v318_v42  ;;  %v316_v42 = vld [vmem:[%s1212_s5 + $0x270] sm:$0xff] }
  0x5a   :  { %444 = vmatprep.subr.mxu0 %v315_v39 }
  0x5b   :  { %445 = vmatpush2.msra.mxu0 %v314_v41 }
  0xe1   :  { %v116_v44 = vpop.f32.mrf.mxu0 }
  0xe2   :  { %v117_v45 = vadd.f32 %v542_v43, %v116_v44  ;;  %v311_v43 = vld [vmem:[%s1212_s5 + $0x248] sm:$0xff]  ;;  %v313_v44 = vld [vmem:[%s1212_s5 + $0x258] sm:$0xff] }
  0xe3   :  { %v594_v46 = vpop.f32.mrf.mxu0  ;;  %446 = vmatprep.subr.mxu0 %v311_v43 }
  0xe4   :  { %v120_v47 = vmax.f32 %v117_v45, 0.0  ;;  %v310_v45 = vld [vmem:[%s1212_s5 + $0x240] sm:$0xff]  ;;  %v312_v46 = vld [vmem:[%s1212_s5 + $0x250] sm:$0xff] }
  0xe5   :  { %447 = vmatpush2.msra.mxu0 %v310_v45 }
  0xe6   :  { %230 = vmatmul.mubr.f32.vlgmr.msra.gmra.mxu1 %v120_v47  ;;  %v307_v47 = vld [vmem:[%s1212_s5 + $0x228] sm:$0xff] }
  0xe7   :  { %460 = vmatpush1.msra.mxu1 %v300_v48  ;;  %v309_v48 = vld [vmem:[%s1212_s5 + $0x238] sm:$0xff]  ;;  %448 = vmatprep.subr.mxu0 %v307_v47 }
  0xe8   :  { %461 = vmatprep.subr.mxu1 %v297_v49  ;;  %v306_v49 = vld [vmem:[%s1212_s5 + $0x220] sm:$0xff] }
  0xe9   :  { %462 = vmatpush1.msra.mxu1 %v296_v50  ;;  %v308_v50 = vld [vmem:[%s1212_s5 + $0x230] sm:$0xff]  ;;  %449 = vmatpush2.msra.mxu0 %v306_v49 }
  0xea   :  { %463 = vmatprep.subr.mxu1 %v293_v51  ;;  %v303_v51 = vld [vmem:[%s1212_s5 + $0x208] sm:$0xff] }
  0xeb   :  { %464 = vmatpush1.msra.mxu1 %v292_v52  ;;  %v305_v52 = vld [vmem:[%s1212_s5 + $0x218] sm:$0xff]  ;;  %450 = vmatprep.subr.mxu0 %v303_v51 }
  0xec   :  { %465 = vmatprep.subr.mxu1 %v289_v53  ;;  %v302_v53 = vld [vmem:[%s1212_s5 + $0x200] sm:$0xff] }
  0xed   :  { %466 = vmatpush1.msra.mxu1 %v288_v54  ;;  %v304_v54 = vld [vmem:[%s1212_s5 + $0x210] sm:$0xff]  ;;  %451 = vmatpush2.msra.mxu0 %v302_v53 }
  0xee   :  { %467 = vmatprep.subr.mxu1 %v285_v55  ;;  %v155_v55 = vlaneseq }
  0xef   :  { %468 = vmatpush1.msra.mxu1 %v284_v56 }
  0xf0   :  { %469 = vmatprep.subr.mxu1 %v281_v57  ;;  %v156_v56 = vshrl.u32 %v155_v55, 7 }
  0xf1   :  { %470 = vmatpush1.msra.mxu1 %v280_v58  ;;  %v153_v58 = vld [vmem:[%s1214_s4] sm:$0x3] }
  0xf2   :  { %471 = vmatprep.subr.mxu1 %v277_v59  ;;  %v157_v57 = vsub.s32 0, %v156_v56  ;;  %v161_v59 = vsub.s32 1, %v156_v56 }
  0xf3   :  { %472 = vmatpush1.msra.mxu1 %v276_v60 }
  0xf4   :  { %473 = vmatprep.subr.mxu1 %v273_v61  ;;  %v158_v60 = vrot.slane %v153_v58, %v157_v57  ;;  %v162_v61 = vrot.slane %v153_v58, %v161_v59 }
  0xf5   :  { %474 = vmatpush1.msra.mxu1 %v272_v62 }
  0xf6   :  { %475 = vmatprep.subr.mxu1 %v269_v63 }
  0xf7   :  { %476 = vmatpush1.msra.mxu1 %v268_v0 }
  0xf8   :  { %477 = vmatprep.subr.mxu1 %v265_v1 }
  0xf9   :  { %478 = vmatpush1.msra.mxu1 %v264_v2 }
  0xfa   :  { %479 = vmatprep.subr.mxu1 %v261_v3 }
  0xfb   :  { %480 = vmatpush1.msra.mxu1 %v260_v4  ;;  %v378_v4 = vsub.s32 2, %v156_v56 }
  0xfc   :  { %481 = vmatprep.subr.mxu1 %v257_v5  ;;  %v366_v5 = vld [vmem:[%s1215_s6] sm:$0xf] }
  0xfd   :  { %482 = vmatpush1.msra.mxu1 %v256_v6  ;;  %v382_v6 = vsub.s32 3, %v156_v56 }
  0xfe   :  { %483 = vmatprep.subr.mxu1 %v253_v7  ;;  %v371_v7 = vrot.slane %v366_v5, %v157_v57 }
  0xff   :  { %484 = vmatpush1.msra.mxu1 %v252_v8  ;;  %v379_v8 = vrot.slane %v366_v5, %v378_v4 }
 0x100   :  { %485 = vmatprep.subr.mxu1 %v249_v9  ;;  %v375_v9 = vrot.slane %v366_v5, %v161_v59 }
 0x101   :  { %486 = vmatpush1.msra.mxu1 %v248_v10  ;;  %v383_v10 = vrot.slane %v366_v5, %v382_v6 }
 0x102   :  { %487 = vmatprep.subr.mxu1 %v245_v11 }
 0x103   :  { %488 = vmatpush1.msra.mxu1 %v244_v12 }
 0x104   :  { %489 = vmatprep.subr.mxu1 %v241_v13 }
 0x105   :  { %490 = vmatpush1.msra.mxu1 %v240_v14 }
 0x106   :  { %491 = vmatprep.subr.mxu1 %v365_v15 }
 0x107   :  { %492 = vmatpush2.msra.mxu1 %v364_v16 }
 0x108   :  { %493 = vmatprep.subr.mxu1 %v361_v17 }
 0x109   :  { %494 = vmatpush2.msra.mxu1 %v360_v18 }
 0x10a   :  { %495 = vmatprep.subr.mxu1 %v357_v19 }
 0x10b   :  { %496 = vmatpush2.msra.mxu1 %v356_v20 }
 0x10c   :  { %497 = vmatprep.subr.mxu1 %v353_v21 }
 0x10d   :  { %498 = vmatpush2.msra.mxu1 %v352_v22 }
 0x10e   :  { %499 = vmatprep.subr.mxu1 %v349_v23 }
 0x10f   :  { %500 = vmatpush2.msra.mxu1 %v348_v24 }
 0x110   :  { %501 = vmatprep.subr.mxu1 %v345_v25 }
 0x111   :  { %502 = vmatpush2.msra.mxu1 %v344_v26 }
 0x112   :  { %503 = vmatprep.subr.mxu1 %v341_v27 }
 0x113   :  { %504 = vmatpush2.msra.mxu1 %v340_v28 }
 0x114   :  { %505 = vmatprep.subr.mxu1 %v337_v29 }
 0x115   :  { %506 = vmatpush2.msra.mxu1 %v336_v30 }
 0x116   :  { %507 = vmatprep.subr.mxu1 %v333_v31 }
 0x117   :  { %508 = vmatpush2.msra.mxu1 %v332_v32 }
 0x118   :  { %509 = vmatprep.subr.mxu1 %v329_v33 }
 0x119   :  { %510 = vmatpush2.msra.mxu1 %v328_v34 }
 0x11a   :  { %511 = vmatprep.subr.mxu1 %v325_v35 }
 0x11b   :  { %512 = vmatpush2.msra.mxu1 %v324_v36 }
 0x11c   :  { %513 = vmatprep.subr.mxu1 %v321_v37 }
 0x11d   :  { %514 = vmatpush2.msra.mxu1 %v320_v38 }
 0x11e   :  { %515 = vmatprep.subr.mxu1 %v317_v40 }
 0x11f   :  { %516 = vmatpush2.msra.mxu1 %v316_v42 }
 0x120   :  { %517 = vmatprep.subr.mxu1 %v313_v44 }
 0x121   :  { %518 = vmatpush2.msra.mxu1 %v312_v46 }
 0x122   :  { %519 = vmatprep.subr.mxu1 %v309_v48 }
 0x123   :  { %520 = vmatpush2.msra.mxu1 %v308_v50 }
 0x124   :  { %521 = vmatprep.subr.mxu1 %v305_v52 }
 0x125   :  { %522 = vmatpush2.msra.mxu1 %v304_v54 }
 0x1a6   :  { %v231_v62 = vpop.f32.mrf.mxu1 }
 0x1a7   :  { %v232_v63 = vadd.f32 %v231_v62, %v158_v60 }
 0x1a8   :  { %v233_v0 = vpop.f32.mrf.mxu1 }
 0x1a9   :  { %v234_v1 = vadd.f32 %v233_v0, %v162_v61  ;;  %v236_v3 = vmax.f32 %v232_v63, 0.0 }
 0x1ab   :  { %v237_v2 = vmax.f32 %v234_v1, 0.0 }
 0x1ad   :  { %452 = vmatprep.mubr.f32.mxu0 %v237_v2  ;;  %523 = vmatprep.mubr.f32.mxu1 %v237_v2 }
 0x1ae   :  { %453 = vmatmul.mubr.f32.vlgmr.msra.gmra.mxu0 %v236_v3  ;;  %524 = vmatmul.mubr.f32.vlgmr.msra.gmra.mxu1 %v236_v3 }
 0x26e   :  { %v454_v11 = vpop.f32.mrf.mxu0  ;;  %v525_v12 = vpop.f32.mrf.mxu1 }
 0x26f   :  { %v455_v13 = vadd.f32 %v454_v11, %v371_v7  ;;  %v526_v14 = vadd.f32 %v525_v12, %v379_v8 }
 0x270   :  { %v456_v15 = vpop.f32.mrf.mxu0  ;;  %v527_v16 = vpop.f32.mrf.mxu1 }
 0x271   :  { %v530_v17 = vmax.f32 %v455_v13, 0.0  ;;  %v532_v18 = vmax.f32 %v526_v14, 0.0  ;;  %v457_v19 = vadd.f32 %v456_v15, %v375_v9  ;;  %v528_v20 = vadd.f32 %v527_v16, %v383_v10 }
 0x273   :  { %534 = vst [vmem:[%s1216_s7] sm:$0xff] %v530_v17  ;;  %536 = vst [vmem:[%s1216_s7 + $0x10] sm:$0xff] %v532_v18  ;;  %v531_v21 = vmax.f32 %v457_v19, 0.0  ;;  %v533_v22 = vmax.f32 %v528_v20, 0.0 }
 0x275   :  { %535 = vst [vmem:[%s1216_s7 + $0x8] sm:$0xff] %v531_v21  ;;  %537 = vst [vmem:[%s1216_s7 + $0x18] sm:$0xff] %v533_v22 }

</bundles_post_ra>
